<compile_context>
chip_gen: v7x
topology: tpu7x:2x2x1
jax: 0.10.0
libtpu: 0.0.40
codegen_flags: <defaults>
</compile_context>

<pallas_src>
import math

import jax
import jax.numpy as jnp
from jax.experimental import pallas as pl
from jax.experimental.pallas import tpu as pltpu


def _round_up(x, m):
    return ((x + m - 1) // m) * m


# --------------------------------- kernels ----------------------------------

def _kernel_f32_out(x_ref, w_ref, b_ref, o_ref):
    """f32 output: accumulate directly into the K-resident output block."""
    k = pl.program_id(2)

    @pl.when(k == 0)
    def _():
        # Bias-init instead of zero-init: removes the finalize branch.
        o_ref[...] = jnp.broadcast_to(b_ref[...], o_ref.shape)

    o_ref[...] += jnp.dot(x_ref[...], w_ref[...],
                          preferred_element_type=jnp.float32)


def _kernel_lowp_out(x_ref, w_ref, b_ref, o_ref, acc_ref):
    """Low-precision (e.g. bf16) output: accumulate in an f32 VMEM scratch."""
    k = pl.program_id(2)

    @pl.when(k == 0)
    def _():
        acc_ref[...] = jnp.broadcast_to(b_ref[...], acc_ref.shape)

    acc_ref[...] += jnp.dot(x_ref[...], w_ref[...],
                            preferred_element_type=jnp.float32)

    @pl.when(k == pl.num_programs(2) - 1)
    def _():
        o_ref[...] = acc_ref[...].astype(o_ref.dtype)


# ------------------------------ param prep ----------------------------------

def prepare_sparse_linear(weight, adj, bias=None, *,
                          compute_dtype=jnp.bfloat16, tn=512, tk=1024):
    """One-time fold/cast/pad of the static parameters (cache across calls)."""
    out_f, in_f = weight.shape
    assert adj.shape == (in_f, out_f)

    # Exact fold of the 0/1 mask, in the (in_f, out_f) layout the MXU wants:
    #   F.linear(x, W * adj.T, b) = x @ (W.T * adj) + b
    w_folded = (weight.T.astype(jnp.float32) * adj.astype(jnp.float32))

    if bias is None:
        bias = jnp.zeros((out_f,), dtype=jnp.float32)
    bias = bias.astype(jnp.float32)

    # Pad to (8, 128) granules, clamp tiles to the padded problem.
    in_p = _round_up(in_f, 128)
    out_p = _round_up(out_f, 128)
    tk = min(tk, in_p)
    tn = min(tn, out_p)
    # Keep >= 2 output tiles when possible so both v7x TensorCores get work
    # even when a small batch only fills one M tile.
    if out_p // tn == 1 and out_p >= 256:
        tn = _round_up(out_p // 2, 128)
    in_p = _round_up(in_p, tk)
    out_p = _round_up(out_p, tn)

    w_p = jnp.pad(w_folded, ((0, in_p - in_f), (0, out_p - out_f)))
    w_p = w_p.astype(compute_dtype)
    b_p = jnp.pad(bias, (0, out_p - out_f)).reshape(1, out_p)  # f32, exact init

    return dict(w=w_p, b=b_p, in_f=in_f, out_f=out_f,
                in_p=in_p, out_p=out_p, tn=tn, tk=tk,
                compute_dtype=jnp.dtype(compute_dtype))


# ------------------------------ forward pass --------------------------------

def sparse_linear_apply(x, params, *, tm=256, weight_buffers=2):
    """x: (B, in_f) -> (B, out_f), same dtype as x."""
    B, in_f = x.shape
    assert in_f == params["in_f"]
    out_f, in_p, out_p = params["out_f"], params["in_p"], params["out_p"]
    tn, tk = params["tn"], params["tk"]
    compute_dtype = params["compute_dtype"]
    out_dtype = x.dtype

    # bf16 packs 16 rows per vreg -> keep the batch/tile 16-sublane granular.
    sub = 16 if compute_dtype.itemsize < 4 else 8
    B_p = _round_up(B, sub)
    tm = _round_up(max(sub, min(tm, B_p)), sub)
    B_p = _round_up(B_p, tm)

    # Only x is padded per call; weight/bias were prepared once.
    x_p = jnp.pad(x.astype(compute_dtype), ((0, B_p - B), (0, in_p - in_f)))

    grid = (B_p // tm, out_p // tn, in_p // tk)

    use_scratch = jnp.dtype(out_dtype).itemsize < 4
    csz = compute_dtype.itemsize
    osz = jnp.dtype(out_dtype).itemsize
    vmem_bytes = (2 * (tm * tk + tk * tn) * csz      # double-buffered x, w
                  + 2 * tn * 4                       # double-buffered bias
                  + 2 * tm * tn * osz                # double-buffered output
                  + (tm * tn * 4 if use_scratch else 0))
    # Cap below 64 MiB: that is the whole per-TensorCore VMEM on v7x.
    vmem_limit = int(min(max(2 * vmem_bytes, 16 * 1024 * 1024),
                         48 * 1024 * 1024))

    w_spec_kwargs = {}
    if weight_buffers != 2:
        # Extra weight buffering only when exposed DMA is observed in traces.
        w_spec_kwargs["pipeline_mode"] = pl.Buffered(weight_buffers)

    kernel = _kernel_lowp_out if use_scratch else _kernel_f32_out
    scratch = [pltpu.VMEM((tm, tn), jnp.float32)] if use_scratch else []

    out = pl.pallas_call(
        kernel,
        out_shape=jax.ShapeDtypeStruct((B_p, out_p), out_dtype),
        grid_spec=pltpu.PrefetchScalarGridSpec(
            num_scalar_prefetch=0,
            grid=grid,
            in_specs=[
                pl.BlockSpec((tm, tk), lambda i, j, k: (i, k)),           # x
                pl.BlockSpec((tk, tn), lambda i, j, k: (k, j),
                             **w_spec_kwargs),                            # w
                pl.BlockSpec((1, tn), lambda i, j, k: (0, j)),            # bias
            ],
            out_specs=pl.BlockSpec((tm, tn), lambda i, j, k: (i, j)),
            scratch_shapes=scratch,
        ),
        compiler_params=pltpu.CompilerParams(
            dimension_semantics=("parallel", "parallel", "arbitrary"),
            vmem_limit_bytes=vmem_limit,
        ),
    )(x_p, params["w"], params["b"])

    return out[:B, :out_f]


# ------------------------------ init & test ---------------------------------

def init_params(key, in_features, out_features):
    """Deterministic init mirroring the PyTorch module's reset_parameters."""
    k_w, k_b, k_adj, k_x = jax.random.split(key, 4)

    fan_in = in_features                        # kaiming_uniform_(a=sqrt(5))
    w_bound = 1.0 / math.sqrt(fan_in)
    weight = jax.random.uniform(k_w, (out_features, in_features),
                                minval=-w_bound, maxval=w_bound,
                                dtype=jnp.float32)
    bias = jax.random.uniform(k_b, (out_features,),
                              minval=-w_bound, maxval=w_bound,
                              dtype=jnp.float32)
    adj = (jax.random.uniform(k_adj, (in_features, out_features))
           < 0.5).astype(jnp.float32)
    return weight, bias, adj, k_x


if __name__ == "__main__":
    # Non-(8,128)-multiple shapes to exercise the padding path.
    batch = 16
    in_features = 300
    out_features = 200

    key = jax.random.PRNGKey(0)
    weight, bias, adj, k_x = init_params(key, in_features, out_features)
    x = jax.random.normal(k_x, (batch, in_features), dtype=jnp.float32)

    # Reference: F.linear(x, weight * adj.T, bias) in full f32.
    ref = x @ (weight * adj.T).T + bias

    # Default path: bf16 compute, f32 accumulation directly in o_ref.
    params = prepare_sparse_linear(weight, adj, bias)
    out = jax.block_until_ready(sparse_linear_apply(x, params))
    assert out.shape == (batch, out_features)
    assert out.dtype == x.dtype
    assert jnp.allclose(out, ref, atol=2e-2, rtol=2e-2), (
        float(jnp.max(jnp.abs(out - ref))))

    # Small-tile path: multi-step M/N/K accumulation.
    params_small = prepare_sparse_linear(weight, adj, bias, tn=128, tk=128)
    out2 = jax.block_until_ready(sparse_linear_apply(x, params_small, tm=16))
    assert jnp.allclose(out2, ref, atol=2e-2, rtol=2e-2)

    # Exact f32-compute path (tight tolerance, scratch-free kernel).
    params_f32 = prepare_sparse_linear(weight, adj, bias,
                                       compute_dtype=jnp.float32)
    out3 = jax.block_until_ready(sparse_linear_apply(x, params_f32))
    assert jnp.allclose(out3, ref, atol=2e-4, rtol=2e-4)

    # bf16-output path (f32 scratch accumulator kernel).
    out4 = jax.block_until_ready(
        sparse_linear_apply(x.astype(jnp.bfloat16), params))
    assert out4.dtype == jnp.bfloat16
    assert jnp.allclose(out4.astype(jnp.float32), ref, atol=5e-2, rtol=5e-2)

    print("KERNEL_OK")
</pallas_src>

<mosaic_0001>
module attributes {stable_mosaic.version = 11 : i64} {
  func.func @_kernel_f32_out(%arg0: i32, %arg1: i32, %arg2: i32, %arg3: memref<16x384xbf16, #tpu.memory_space<vmem>>, %arg4: memref<384x128xbf16, #tpu.memory_space<vmem>>, %arg5: memref<1x128xf32, #tpu.memory_space<vmem>>, %arg6: memref<16x128xf32, #tpu.memory_space<vmem>>) attributes {dimension_semantics = [#tpu.dimension_semantics<parallel>, #tpu.dimension_semantics<parallel>, #tpu.dimension_semantics<arbitrary>], iteration_bounds = array<i64: 1, 2, 1>, scalar_prefetch = 0 : i64, scratch_operands = 0 : i64, tpu.core_type = #tpu.core_type<tc>, window_params = [{transform_indices = @transform_0, window_bounds = array<i64: 16, 384>}, {transform_indices = @transform_1, window_bounds = array<i64: 384, 128>}, {transform_indices = @transform_2, window_bounds = array<i64: 1, 128>}, {transform_indices = @transform_3, window_bounds = array<i64: 16, 128>}]} {
    %c0_i32 = arith.constant 0 : i32
    %0 = arith.cmpi eq, %arg2, %c0_i32 : i32
    %1 = arith.extui %0 : i1 to i32
    %c0_i32_0 = arith.constant 0 : i32
    %2 = arith.cmpi ne, %1, %c0_i32_0 : i32
    scf.if %2 {
      %c0_8 = arith.constant 0 : index
      %c0_9 = arith.constant 0 : index
      %9 = vector.load %arg5[%c0_8, %c0_9] : memref<1x128xf32, #tpu.memory_space<vmem>>, vector<1x128xf32>
      %10 = vector.shape_cast %9 : vector<1x128xf32> to vector<1x128xf32>
      %11 = vector.broadcast %10 : vector<1x128xf32> to vector<16x128xf32>
      %c0_10 = arith.constant 0 : index
      %c0_11 = arith.constant 0 : index
      %12 = vector.load %arg6[%c0_10, %c0_11] : memref<16x128xf32, #tpu.memory_space<vmem>>, vector<16x128xf32>
      tpu.vector_store %arg6[%c0_10, %c0_11], %11 {strides = array<i32>} : memref<16x128xf32, #tpu.memory_space<vmem>>, vector<16x128xf32>,
    } else {
    }
    %c0 = arith.constant 0 : index
    %c0_1 = arith.constant 0 : index
    %3 = vector.load %arg6[%c0, %c0_1] : memref<16x128xf32, #tpu.memory_space<vmem>>, vector<16x128xf32>
    %c0_2 = arith.constant 0 : index
    %c0_3 = arith.constant 0 : index
    %4 = vector.load %arg3[%c0_2, %c0_3] : memref<16x384xbf16, #tpu.memory_space<vmem>>, vector<16x384xbf16>
    %c0_4 = arith.constant 0 : index
    %c0_5 = arith.constant 0 : index
    %5 = vector.load %arg4[%c0_4, %c0_5] : memref<384x128xbf16, #tpu.memory_space<vmem>>, vector<384x128xbf16>
    %cst = arith.constant dense<0.000000e+00> : vector<16x128xf32>
    %6 = tpu.matmul %4, %5, %cst {dimension_numbers = #tpu.dot_dimension_numbers<[1], [0], [0], [1], [0, 0, 1, 1], [], []>} : vector<16x384xbf16>, vector<384x128xbf16>, vector<16x128xf32> -> vector<16x128xf32>
    %7 = arith.addf %3, %6 : vector<16x128xf32>
    %c0_6 = arith.constant 0 : index
    %c0_7 = arith.constant 0 : index
    %8 = vector.load %arg6[%c0_6, %c0_7] : memref<16x128xf32, #tpu.memory_space<vmem>>, vector<16x128xf32>
    tpu.vector_store %arg6[%c0_6, %c0_7], %7 {strides = array<i32>} : memref<16x128xf32, #tpu.memory_space<vmem>>, vector<16x128xf32>,
    return
  }
  func.func @transform_0(%arg0: i32, %arg1: i32, %arg2: i32) -> (i32, i32) {
    %c0_i32 = arith.constant 0 : i32
    return %arg0, %arg2 : i32, i32
  }
  func.func @transform_1(%arg0: i32, %arg1: i32, %arg2: i32) -> (i32, i32) {
    %c0_i32 = arith.constant 0 : i32
    return %arg2, %arg1 : i32, i32
  }
  func.func @transform_2(%arg0: i32, %arg1: i32, %arg2: i32) -> (i32, i32) {
    %c0_i32 = arith.constant 0 : i32
    %c0_i32_0 = arith.constant 0 : i32
    return %c0_i32, %arg1 : i32, i32
  }
  func.func @transform_3(%arg0: i32, %arg1: i32, %arg2: i32) -> (i32, i32) {
    %c0_i32 = arith.constant 0 : i32
    return %arg0, %arg1 : i32, i32
  }
}

</mosaic_0001>

<bundles_post_ra>
// kernel: tpu_custom_call.1
= control target key start
LH: loop header
LB: loop body
LE: loop exit
PB: predicated region body
PF: predicated region fallthrough
CT: control target
= control target key end

     0   :  { %8 = vsyncpa [#allocation3], 0  ;;  %s1340_s0 = inlined_call_operand.hbm [shape: bf16[16,384], index: 0, kind: input, shape index: {}]   ;;  %s1341_s1 = inlined_call_operand.hbm [shape: bf16[384,256], index: 1, kind: input, shape index: {}]   ;;  %s1342_s2 = inlined_call_operand.vmem [shape: f32[1,256], index: 2, kind: input, shape index: {}]   ;;  %s1343_s3 = inlined_call_operand.hbm [shape: f32[16,256], index: 3, kind: output, shape index: {}]  }
   0x1   :  { %9 = vsyncpa [#allocation6], 0 }
   0x2   :  { %11 = vsyncpa [#allocation6 + $0x1], 0 }
   0x3   :  { %12 = vsyncpa [#allocation4], 0 }
   0x4   :  { %14 = vsyncpa [#allocation4 + $0x1], 0  ;;  %s1088_s12 = smov 0   ;;  %s1090_s13 = smov 0  }
   0x5   :  { %s1092_s14 = smov 0   ;;  %s1094_s15 = smov 0  }
   0x6   :  { %s1096_s16 = smov 0   ;;  %s1098_s17 = smov 0  }
   0x7 LB: > { %s704_s18 = sadd.s32 4294967295, %s1053_s17   ;;  %s705_s19 = sadd.s32 4294967294, %s1053_s17   ;;  %s1053_s17 = sphi %s1098_s17, %s20_s17   ;;  %s1049_s16 = sphi %s1096_s16, %s1369_s16   ;;  %s1045_s15 = sphi %s1094_s15, %s1368_s15   ;;  %s1041_s14 = sphi %s1092_s14, %s1367_s14   ;;  %s1037_s13 = sphi %s1090_s13, %s1366_s13   ;;  %s1033_s12 = sphi %s1088_s12, %s1365_s12  }
   0x8   : > { %p83_p0 = scmp.ne.s32.totalorder %s1041_s14, %s1037_s13  ;;  %p84_p1 = scmp.eq.s32.totalorder %s1053_s17, 0 }
   0x9   : > { %p89_p2 = scmp.ne.s32.totalorder %s1037_s13, %s1033_s12  ;;  %p1125_p3 = scmp.eq.s32.totalorder %s704_s18, 0 }
   0xa   : > { %p1129_p4 = por %p84_p1, %p83_p0  ;;  %p141_p5 = scmp.eq.s32.totalorder %s704_s18, 1 }
   0xb   : > { %s1350_s20 = scalar_select %p1125_p3, 1, 0 }
   0xc   : > { %p1135_p6 = por %p1125_p3, %p89_p2  ;;  %p147_p7 = scmp.eq.s32.totalorder %s705_s19, 1 }
   0xd   : > { %p1139_p8 = por %p141_p5, %p83_p0  ;;  %p706_p9 = scmp.ge.s32.totalorder %s1053_s17, 1 }
   0xe   : > { %s1352_s22 = scalar_select %p1135_p6, 1, 0 }
   0xf   : > { %s1353_s23 = scalar_select %p1139_p8, 1, 0 }
  0x10   : > { %p1144_p10 = por %p147_p7, %p89_p2  ;;  %p154_p11 = scmp.lt.s32.totalorder %s1053_s17, 3 }
  0x11   : > { %s1055_s26 = smov [#allocation2]   ;;  %p819_p1 = scmp.lt.s32.totalorder %s1053_s17, 2 }
  0x12   : > { %s1354_s24 = scalar_select %p1144_p10, 1, 0 }
  0x13   : > { %p1149_p12 = pnand %p706_p9, %p154_p11  ;;  %s172_s27 = sshll.u32 %s1055_s26, 4  ;;  %s1153_s27 = int_to_ptr.vmem [resolvable:$true] %s172_s27 }
  0x14   : > { %p1167_p2 = pnand %p819_p1, %p1129_p4  ;;  %s35_s30 = sadd.s32 1, %s1049_s16 }
  0x15   : > { %s1355_s25 = scalar_select %p1149_p12, 1, 0 }
  0x16   : > { %p806_p13 = pneg %p1149_p12  ;;  %s909_s6 = scalar_lea.hbm %s1340_s0, 384 }
  0x17   : > { %s1357_s29 = scalar_select %p1167_p2, 1, 0 }
  0x18   : > { %p1161_p5 = pnand %p806_p13, %p1125_p3  ;;  %p910_p7 = scmp.ne.s32.totalorder %s1340_s0, %s909_s6 }
  0x19   : > { %p916_p4 = scmp.lt.u32.totalorder %s909_s6, %s1340_s0 }
  0x1a   : > { %p911_p9 = pneg %p1161_p5 }
  0x1c   : > { %p912_p11 = pnand %p911_p9, %p910_p7 }
  0x1e   : > { %p913_p13 = pneg %p912_p11 }
  0x20   : > { %p918_p1 = pnand %p916_p4, %p913_p13 }
  0x22   : > { %921 = shalt.err (!%p918_p1)
}
  0x23   : > { %s922_s11 = scalar_lea.vmem %s1153_s27, 384  ;;  %p930_p6 = scmp.lt.s32.totalorder %s1153_s27, %s1153_s27 }
  0x24   : > { %p923_p0 = scmp.ne.s32.totalorder %s1153_s27, %s922_s11  ;;  %p931_p3 = scmp.lt.s32.totalorder %s922_s11, %s922_s11 }
  0x26   : > { %p925_p10 = pnand %p923_p0, %p911_p9  ;;  %p932_p12 = por %p931_p3, %p930_p6 }
  0x28   : > { %p926_p8 = pneg %p925_p10 }
  0x2a   : > { %p933_p2 = pnand %p932_p12, %p926_p8 }
  0x2c   : > { %936 = shalt.err (!%p933_p2)
}
  0x2d   : > { %s1056_s18 = smov 192   ;;  %s1057_s19 = smov 12  }
  0x2e   : > { %809 = dma.hbm_to_vmem [thread:$0]  (!%p1161_p5), %s1340_s0, 384, %s1153_s27, [#allocation3], %s1056_s18, %s1056_s18, %s1057_s19  }
  0x2f   : > { %p37_p10 = scmp.ge.s32.totalorder %s35_s30, 2  ;;  %s76_s4 = sadd.s32 1, %s1041_s14 }
  0x30   : > { %s186_s5 = sand.u32 1, %s1041_s14   ;;  %s709_s8 = sshll.u32 %s1049_s16, 6 }
  0x31   : > { %s1371_s30 = smov (%p37_p10, %s35_s30), 0  ;;  %s796_s6 = smul.u32 192, %s186_s5 }
  0x32   : > { %s72_s7 = ssub.s32 %s1049_s16, %s1371_s30  ;;  %s1203_s28 = scalar_lea.hbm %s1341_s1, %s709_s8 }
  0x33   : > { %p74_p3 = scmp.eq.s32.totalorder %s72_s7, 0  ;;  %s190_s27 = scalar_lea.vmem [#allocation5], %s796_s6 }
  0x34   : > { %s199_s11 = sshll.u32 %s190_s27, 4  ;;  %s1210_s19 = scalar_lea.sflag [#allocation6], %s186_s5  ;;  %s1208_s11 = int_to_ptr.vmem [resolvable:$true] %s199_s11 }
  0x35   : > { %s1206_s18 = scalar_select %p74_p3, %s1041_s14, %s76_s4  }
  0x36   : > { %s937_s21 = scalar_lea.hbm %s1203_s28, 3072  ;;  %p1358_p8 = scmp.ne.s32.totalorder %s1357_s29, 0 }
  0x37   : > { %p938_p6 = scmp.ne.s32.totalorder %s1203_s28, %s937_s21  ;;  %s942_s8 = scalar_lea.hbm %s1341_s1, 6144 }
  0x38   : > { %p939_p12 = pneg %p1358_p8  ;;  %p943_p2 = scmp.lt.u32.totalorder %s1203_s28, %s1341_s1 }
  0x39   : > { %p944_p7 = scmp.lt.u32.totalorder %s942_s8, %s937_s21  ;;  %p946_p11 = scmp.lt.u32.totalorder %s937_s21, %s1203_s28 }
  0x3a   : > { %p940_p0 = pnand %p939_p12, %p938_p6 }
  0x3b   : > { %p945_p9 = por %p944_p7, %p943_p2 }
  0x3c   : > { %p941_p5 = pneg %p940_p0 }
  0x3d   : > { %p947_p13 = por %p946_p11, %p945_p9 }
  0x3f   : > { %p948_p4 = pnand %p947_p13, %p941_p5 }
  0x41   : > { %951 = shalt.err (!%p948_p4)
}
  0x42   : > { %s952_s4 = scalar_lea.vmem %s1208_s11, 3072  ;;  %s1058_s5 = smov [#allocation5]  }
  0x43   : > { %p953_p1 = scmp.ne.s32.totalorder %s1208_s11, %s952_s4  ;;  %s957_s10 = sshll.u32 %s1058_s5, 4  ;;  %s958_s10 = int_to_ptr.vmem [resolvable:$false] %s957_s10 }
  0x44   : > { %s959_s27 = scalar_lea.vmem %s958_s10, 6144  ;;  %p960_p6 = scmp.lt.s32.totalorder %s1208_s11, %s958_s10 }
  0x45   : > { %p955_p10 = pnand %p953_p1, %p939_p12  ;;  %p961_p0 = scmp.lt.s32.totalorder %s959_s27, %s952_s4 }
  0x47   : > { %p956_p3 = pneg %p955_p10  ;;  %p962_p2 = por %p961_p0, %p960_p6 }
  0x49   : > { %p963_p7 = pnand %p962_p2, %p956_p3 }
  0x4b   : > { %966 = shalt.err (!%p963_p7)
}
  0x4c   : > { %s1059_s21 = smov 128   ;;  %s1060_s26 = smov 64  }
  0x4d   : > { %s1061_s7 = smov 4   ;;  %p1359_p12 = scmp.ne.s32.totalorder %s1355_s25, 0 }
  0x4e   : > { %813 = dma.hbm_to_vmem [thread:$0]  (!%p1358_p8), %s1203_s28, 3072, %s1208_s11, %s1210_s19, %s1059_s21, %s1060_s26, %s1061_s7  }
  0x4f   : > { %217 = sbr.rel (%p1359_p12) target bundleno = 363 (0x16b), region = 32  ;;  %p1360_p5 = scmp.ne.s32.totalorder (!%p1359_p12), %s1350_s20, 0 }
  0x56   : > { %1020 = dma.done.wait (%p1360_p5), [#allocation3], 384  }
  0x57   : > { %1022 = vsyncadd (%p1360_p5), [#allocation3], 4294966912  ;;  %s1245_s8 = sand.u32 1, %s1037_s13   ;;  %p1361_p8 = scmp.ne.s32.totalorder %s1352_s22, 0 }
  0x58   : > { %s797_s6 = smul.u32 192, %s1245_s8  ;;  %s224_s9 = scalar_lea.sflag [#allocation6], %s1245_s8 }
  0x5a   : > { %s1249_s4 = scalar_lea.vmem [#allocation5], %s797_s6 }
  0x5b   : > { %1024 = dma.done.wait (%p1361_p8), %s224_s9, 3072  }
  0x5c   : > { %1026 = vsyncadd (%p1361_p8), %s224_s9, 4294964224  ;;  %v1062_v0 = vmov 0.0   ;;  %vm1063_vm0 = vmmov 0   ;;  %v881_v1 = vld [vmem:[%s1249_s4 + $0x40] sm:$0xff]   ;;  %v884_v4 = vld [vmem:[%s1249_s4 + $0x48] sm:$0xff]   ;;  %p256_p9 = scmp.lt.s32.totalorder %s1045_s15, 1 }
  0x5d   : > { %776 = vmatprep.subr.bf16.mxu1 %v1062_v0  ;;  %792 = vmatprep.mubr.msk.bf16.mxu1 %vm1063_vm0, %v1062_v0  ;;  %v882_v2 = vld [vmem:[%s1249_s4] sm:$0xff]   ;;  %v885_v5 = vld [vmem:[%s1249_s4 + $0x8] sm:$0xff]   ;;  %v887_v7 = vld [vmem:[%s1249_s4 + $0x50] sm:$0xff]   ;;  %s712_s22 = sshll.u32 %s1245_s8, 4  ;;  %s742_s11 = sshll.u32 %s1045_s15, 7 }
  0x5e   : > { %745 = vmatprep.subr.bf16.mxu0 %v881_v1  ;;  %v883_v3 = vld [vmem:[%s1249_s4 + $0x80] sm:$0xff]   ;;  %v886_v6 = vld [vmem:[%s1249_s4 + $0x88] sm:$0xff]   ;;  %v888_v8 = vld [vmem:[%s1249_s4 + $0x10] sm:$0xff]   ;;  %s257_s20 = scalar_select %p256_p9, %s1045_s15, 1 }
  0x5f   : > { %746 = vmatpush3.bf16.msra.mxu0 %v882_v2  ;;  %777 = vmatpush3.bf16.msra.mxu1 %v883_v3  ;;  %v889_v9 = vld [vmem:[%s1249_s4 + $0x90] sm:$0xff]   ;;  %v890_v10 = vld [vmem:[%s1249_s4 + $0x58] sm:$0xff]   ;;  %v893_v13 = vld [vmem:[%s1249_s4 + $0x60] sm:$0xff]   ;;  %s252_s19 = scalar_lea.vmem [#allocation7], %s712_s22  ;;  %s1289_s21 = scalar_lea.hbm %s1343_s3, %s742_s11 }
  0x60   : > { %747 = vmatprep.subr.bf16.mxu0 %v884_v4  ;;  %778 = vmatprep.subr.bf16.mxu1 %v1062_v0  ;;  %v891_v11 = vld [vmem:[%s1249_s4 + $0x18] sm:$0xff]   ;;  %v894_v14 = vld [vmem:[%s1249_s4 + $0x20] sm:$0xff]   ;;  %v896_v16 = vld [vmem:[%s1249_s4 + $0x68] sm:$0xff]   ;;  %s258_s28 = scalar_lea.vmem %s1342_s2, %s257_s20  ;;  %s590_s5 = sshll.u32 %s252_s19, 4  ;;  %s1291_s5 = int_to_ptr.vmem [resolvable:$true] %s590_s5 }
  0x61   : > { %v892_v12 = vld [vmem:[%s1249_s4 + $0x98] sm:$0xff]   ;;  %v895_v15 = vld [vmem:[%s1249_s4 + $0xa0] sm:$0xff]   ;;  %v897_v17 = vld [vmem:[%s1249_s4 + $0x28] sm:$0xff]   ;;  %s575_s15 = scalar_lea.sflag [#allocation4], %s1245_s8  ;;  %s967_s26 = scalar_lea.vmem %s1291_s5, 256 }
  0x62   : > { %v898_v18 = vld [vmem:[%s1249_s4 + $0xa8] sm:$0xff]   ;;  %v899_v19 = vld [vmem:[%s1249_s4 + $0x70] sm:$0xff]   ;;  %v902_v22 = vld [vmem:[%s1249_s4 + $0x78] sm:$0xff]   ;;  %p968_p11 = scmp.ne.s32.totalorder %s1291_s5, %s967_s26  ;;  %p1362_p13 = scmp.ne.s32.totalorder %s1353_s23, 0 }
  0x63   : > { %748 = vmatpush3.bf16.msra.mxu0 %v885_v5  ;;  %779 = vmatpush3.bf16.msra.mxu1 %v886_v6  ;;  %v900_v20 = vld [vmem:[%s1249_s4 + $0x30] sm:$0xff]   ;;  %v907_v23 = vld [vmem:[#allocation2 + $0x4] ss:$12 sps:$4 sm:$0xff]   ;;  %v713_v34 = vld [vmem:[%s258_s28] ss:$0 sm:$0xff]  ;;  %s1064_s7 = smov [#allocation7]  }
  0x64   : > { %749 = vmatprep.subr.bf16.mxu0 %v887_v7  ;;  %780 = vmatprep.subr.bf16.mxu1 %v1062_v0  ;;  %v901_v21 = vld [vmem:[%s1249_s4 + $0xb0] sm:$0xff]   ;;  %v903_v24 = vld [vmem:[%s1249_s4 + $0x38] sm:$0xff]   ;;  %p969_p4 = pnand %p968_p11, %p1362_p13  ;;  %s971_s6 = sshll.u32 %s1064_s7, 4  ;;  %s972_s6 = int_to_ptr.vmem [resolvable:$false] %s971_s6 }
  0x65   : > { %520 = vmatprep.mubr.bf16.mxu0 %v907_v23  ;;  %v904_v25 = vld [vmem:[%s1249_s4 + $0xb8] sm:$0xff]   ;;  %v905_v26 = vld [vmem:[#allocation2] ss:$12 sps:$4 sm:$0xff]   ;;  %s973_s9 = scalar_lea.vmem %s972_s6, 512  ;;  %p974_p10 = scmp.lt.s32.totalorder %s1291_s5, %s972_s6 }
  0x66   : > { %v908_v27 = vld [vmem:[#allocation2 + $0x8] ss:$12 sps:$4 sm:$0xff]   ;;  %p970_p1 = pneg %p969_p4  ;;  %p975_p3 = scmp.lt.s32.totalorder %s973_s9, %s967_s26 }
  0x67   : > { %750 = vmatpush3.bf16.msra.mxu0 %v888_v8  ;;  %781 = vmatpush3.bf16.msra.mxu1 %v889_v9 }
  0x68   : > { %751 = vmatprep.subr.bf16.mxu0 %v890_v10  ;;  %782 = vmatprep.subr.bf16.mxu1 %v1062_v0  ;;  %p976_p6 = por %p975_p3, %p974_p10 }
  0x6a   : > { %p977_p0 = pnand %p976_p6, %p970_p1 }
  0x6b   : > { %752 = vmatpush3.bf16.msra.mxu0 %v891_v11  ;;  %783 = vmatpush3.bf16.msra.mxu1 %v892_v12 }
  0x6c   : > { %753 = vmatprep.subr.bf16.mxu0 %v893_v13  ;;  %784 = vmatprep.subr.bf16.mxu1 %v1062_v0 }
  0x6f   : > { %754 = vmatpush3.bf16.msra.mxu0 %v894_v14  ;;  %785 = vmatpush3.bf16.msra.mxu1 %v895_v15 }
  0x70   : > { %755 = vmatprep.subr.bf16.mxu0 %v896_v16  ;;  %786 = vmatprep.subr.bf16.mxu1 %v1062_v0 }
  0x73   : > { %756 = vmatpush3.bf16.msra.mxu0 %v897_v17  ;;  %787 = vmatpush3.bf16.msra.mxu1 %v898_v18 }
  0x74   : > { %757 = vmatprep.subr.bf16.mxu0 %v899_v19  ;;  %788 = vmatprep.subr.bf16.mxu1 %v1062_v0 }
  0x77   : > { %758 = vmatpush3.bf16.msra.mxu0 %v900_v20  ;;  %789 = vmatpush3.bf16.msra.mxu1 %v901_v21 }
  0x78   : > { %759 = vmatprep.subr.bf16.mxu0 %v902_v22  ;;  %790 = vmatprep.subr.bf16.mxu1 %v1062_v0 }
  0x7b   : > { %760 = vmatpush3.bf16.msra.mxu0 %v903_v24  ;;  %791 = vmatpush3.bf16.msra.mxu1 %v904_v25 }
  0x7e   : > { %521 = vmatmul.mubr.bf16.vlgmr.msra.gmra.mrb[0].mxu0 %v905_v26  ;;  %793 = vmatmul.mubr.bf16.vlgmr.msra.gmra.mrb[0].mxu1 %v908_v27 }
 0x151   : > { %v761_v28 = vpop.f32.mrb[0].mxu0  ;;  %v563_v29 = vpop.f32.mrb[0].mxu1 }
 0x152   : > { %v762_v30 = vpop.f32.mrb[1].mxu0  ;;  %v794_v32 = vpop.f32.mrb[1].mxu1 }
 0x153   : > { %v763_v31 = vadd.f32 %v762_v30, %v761_v28  ;;  %v764_v33 = vpop.f32.mrb[2].mxu0  ;;  %v566_v35 = vpop.f32.mrb[2].mxu1 }
 0x154   : > { %v765_v36 = vpop.f32.mrb[3].mxu0  ;;  %v795_v39 = vpop.f32.mrb[3].mxu1 }
 0x155   : > { %v564_v37 = vadd.f32 %v763_v31, %v563_v29  ;;  %v766_v38 = vadd.f32 %v765_v36, %v764_v33 }
 0x157   : > { %v570_v40 = vadd.f32 %v713_v34, %v564_v37  ;;  %v567_v41 = vadd.f32 %v766_v38, %v566_v35 }
 0x159   : > { %572 = vst [vmem:[%s252_s19] sm:$0xff] %v570_v40  ;;  %v571_v42 = vadd.f32 %v713_v34, %v567_v41 }
 0x15b   : > { %573 = vst [vmem:[%s252_s19 + $0x8] sm:$0xff] %v571_v42 }
 0x15c   : > { %980 = shalt.err (!%p977_p0)
}
 0x15d   : > { %s981_s4 = scalar_lea.hbm %s1289_s21, 256  ;;  %s985_s25 = scalar_lea.hbm %s1343_s3, 512 }
 0x15e   : > { %p982_p2 = scmp.ne.s32.totalorder %s1289_s21, %s981_s4  ;;  %p986_p5 = scmp.lt.u32.totalorder %s1289_s21, %s1343_s3 }
 0x15f   : > { %p987_p8 = scmp.lt.u32.totalorder %s985_s25, %s981_s4  ;;  %p989_p11 = scmp.lt.u32.totalorder %s981_s4, %s1289_s21 }
 0x160   : > { %p983_p7 = pnand %p982_p2, %p1362_p13 }
 0x161   : > { %p988_p9 = por %p987_p8, %p986_p5 }
 0x162   : > { %p984_p12 = pneg %p983_p7 }
 0x163   : > { %p990_p4 = por %p989_p11, %p988_p9 }
 0x165   : > { %p991_p1 = pnand %p990_p4, %p984_p12 }
 0x167   : > { %994 = shalt.err (!%p991_p1)
}
 0x168   : > { %s1065_s11 = smov 128   ;;  %s1066_s19 = smov 256  }
 0x169   : > { %s1067_s10 = smov 8  }
 0x16a   : > { %804 = dma.vmem_to_hbm [thread:$0]  (%p1362_p13), %s1291_s5, 256, %s1289_s21, %s575_s15, %s1065_s11, %s1066_s19, %s1067_s10  }
 0x16b PF: > { %s605_s27 = sand.u32 1, %s1033_s12   ;;  %p1363_p10 = scmp.ne.s32.totalorder %s1354_s24, 0 }
 0x16c   : > { %p1364_p3 = scmp.ge.s32.totalorder %s1053_s17, 2  ;;  %s606_s26 = scalar_lea.sflag [#allocation4], %s605_s27 }
 0x16e   : > { %p815_p6 = pnand %p1364_p3, %p1363_p10 }
 0x170   : > { %1028 = dma.done.wait (!%p815_p6), %s606_s26, 256  }
 0x171   : > { %1030 = vsyncadd (!%p815_p6), %s606_s26, 4294967040  ;;  %s20_s17 = sadd.s32 1, %s1053_s17   ;;  %s1365_s12 = smov %s1037_s13 }
 0x172   : > { %p17_p0 = scmp.ge.s32.totalorder %s20_s17, 4   ;;  %s1366_s13 = smov %s1041_s14 }
 0x173   : > { %s1367_s14 = smov %s1206_s18  ;;  %s1368_s15 = smov %s1049_s16 }
 0x174   : > { %s1369_s16 = smov %s1371_s30  ;;  %19 = sbr.rel (!%p17_p0) target bundleno = 7 (0x7), region = 90 }
 0x17b   :  { %611 = vsyncpa [#allocation3], 1 }
 0x17c   :  { %613 = vsyncpa [#allocation3 + $0x1], 1 }
 0x17d   :  { %614 = vsyncpa [#allocation6], 1 }
 0x17e   :  { %616 = vsyncpa [#allocation6 + $0x1], 1 }
 0x17f   :  { %617 = vsyncpa [#allocation4], 1 }
 0x180   :  { %619 = vsyncpa [#allocation4 + $0x1], 1 }

</bundles_post_ra>
